<compile_context>
chip_gen: v5e
topology: v5e:2x2
jax: 0.10.0
libtpu: 0.0.40
codegen_flags: <defaults>
</compile_context>

<pallas_src>
import functools
import math

import jax
import jax.numpy as jnp
from jax.experimental import pallas as pl
from jax.experimental.pallas import tpu as pltpu


# --------------------------------------------------------------------------
# helpers
# --------------------------------------------------------------------------

def _query_vmem_limit():
    """Scoped-VMEM limit: ~3/4 of physical, capped at 100 MiB.

    v5e default scoped limit (16 MiB) is too small for the fused FFN kernel;
    v7x physical VMEM is only 64 MiB so we must stay below it.
    """
    try:
        cap = getattr(pltpu.get_tpu_info(), "vmem_capacity_bytes", None)
        if cap:
            return int(min(100 * 1024 * 1024, cap * 3 // 4))
    except Exception:
        pass
    return None


_VMEM_LIMIT = _query_vmem_limit()


def _cparams(*semantics):
    kw = {"dimension_semantics": semantics}
    if _VMEM_LIMIT is not None:
        kw["vmem_limit_bytes"] = _VMEM_LIMIT
    return pltpu.CompilerParams(**kw)


def _resident(block_shape, index_map):
    """BlockSpec for a grid-resident operand (constant index_map).

    Single-buffered (pl.Buffered(1)) so default double-buffering does not
    duplicate weight VMEM; block never re-fetches so no pipelining is lost.
    """
    try:
        return pl.BlockSpec(block_shape, index_map, pipeline_mode=pl.Buffered(1))
    except Exception:  # jax version without pipeline_mode on BlockSpec
        return pl.BlockSpec(block_shape, index_map)


def _row_tile(n, target):
    """Largest multiple-of-8 row tile <= target that divides n (fallback n)."""
    t = min(target, n)
    t -= t % 8
    while t >= 8:
        if n % t == 0:
            return t
        t -= 8
    return n  # TODO(synk): full-array fallback if n has no multiple-of-8 divisor.


def _col_tile(n, target):
    """Largest multiple-of-128 lane tile <= target that divides n (fallback n)."""
    t = min(target, n)
    t -= t % 128
    while t >= 128:
        if n % t == 0:
            return t
        t -= 128
    return n


# --------------------------------------------------------------------------
# Pallas kernels
# --------------------------------------------------------------------------

def _embed_kernel(x_ref, w_ref, b_ref, pe_ref, o_ref, *, scale):
    # (x @ W + b) * sqrt(D) + PE   (fused embedding epilogue)
    y = jnp.dot(x_ref[0], w_ref[...], preferred_element_type=jnp.float32)
    y = (y + b_ref[...]) * scale + pe_ref[...].astype(jnp.float32)
    o_ref[0] = y.astype(o_ref.dtype)


def _attn_block_kernel(h_ref, wq_ref, wk_ref, wv_ref, bq_ref, bk_ref, bv_ref,
                       wo_ref, bo_ref, g_ref, bt_ref, o_ref, acc_ref, *,
                       scale, eps):
    """One (batch, head) grid step of the fused attention block.

    Computes q/k/v for this head in VMEM (no HBM qkv tensor), does softmax
    attention, and accumulates out_h @ Wo[head] into a (T, D) f32 scratch.
    The last head step adds out_proj bias + residual and applies LayerNorm1.
    """
    hh = pl.program_id(1)

    @pl.when(hh == 0)
    def _():
        acc_ref[...] = jnp.zeros_like(acc_ref)

    x = h_ref[0]                                          # (T, D) bf16

    q = jnp.dot(x, wq_ref[0], preferred_element_type=jnp.float32) + bq_ref[0]
    k = jnp.dot(x, wk_ref[0], preferred_element_type=jnp.float32) + bk_ref[0]
    v = jnp.dot(x, wv_ref[0], preferred_element_type=jnp.float32) + bv_ref[0]

    s = jax.lax.dot_general(q.astype(jnp.bfloat16), k.astype(jnp.bfloat16),
                            (((1,), (1,)), ((), ())),
                            preferred_element_type=jnp.float32) * scale
    m = jnp.max(s, axis=-1, keepdims=True)
    p = jnp.exp(s - m)
    p = p * pl.reciprocal(jnp.sum(p, axis=-1, keepdims=True), approx=True)

    o_h = jnp.dot(p.astype(jnp.bfloat16), v.astype(jnp.bfloat16),
                  preferred_element_type=jnp.float32)      # (T, dh)
    # out_proj fused per-head: no concatenate, direct (T, D) accumulation.
    acc_ref[...] += jnp.dot(o_h.astype(jnp.bfloat16), wo_ref[0],
                            preferred_element_type=jnp.float32)

    @pl.when(hh == pl.num_programs(1) - 1)
    def _():
        y = acc_ref[...] + bo_ref[...] + x.astype(jnp.float32)
        mu = jnp.mean(y, axis=-1, keepdims=True)
        d = y - mu
        var = jnp.mean(d * d, axis=-1, keepdims=True)
        inv = jax.lax.rsqrt(var + eps)
        o_ref[0] = (d * inv * g_ref[...] + bt_ref[...]).astype(o_ref.dtype)


def _ffn_ln_kernel(h_ref, w1_ref, b1_ref, w2_ref, b2_ref, g_ref, bt_ref,
                   o_ref, acc_ref, *, eps):
    """LayerNorm(h + lin2(relu(lin1(h)))) with the F axis tiled on the grid."""
    c = pl.program_id(1)

    @pl.when(c == 0)
    def _():
        acc_ref[...] = jnp.zeros_like(acc_ref)

    h = h_ref[...]                                         # (TM, D) bf16
    z = jnp.dot(h, w1_ref[...], preferred_element_type=jnp.float32) + b1_ref[...]
    z = jnp.maximum(z, 0.0)
    acc_ref[...] += jnp.dot(z.astype(w2_ref.dtype), w2_ref[...],
                            preferred_element_type=jnp.float32)

    @pl.when(c == pl.num_programs(1) - 1)
    def _():
        y = acc_ref[...] + b2_ref[...] + h.astype(jnp.float32)
        mu = jnp.mean(y, axis=-1, keepdims=True)
        d = y - mu
        var = jnp.mean(d * d, axis=-1, keepdims=True)
        inv = jax.lax.rsqrt(var + eps)
        o_ref[...] = (d * inv * g_ref[...] + bt_ref[...]).astype(o_ref.dtype)


# --------------------------------------------------------------------------
# pallas_call wrappers
# --------------------------------------------------------------------------

def embed(x, wt, b, pe, scale):
    """x: (B, T, Din) bf16; wt: (Din, D) bf16; b: (D,) f32; pe: (T, D) bf16."""
    B, T, Din = x.shape
    D = wt.shape[1]
    tt = _row_tile(T, target=512)
    return pl.pallas_call(
        functools.partial(_embed_kernel, scale=scale),
        out_shape=jax.ShapeDtypeStruct((B, T, D), jnp.bfloat16),
        grid=(B, T // tt),
        in_specs=[
            pl.BlockSpec((1, tt, Din), lambda bi, ti: (bi, ti, 0)),
            _resident((Din, D), lambda bi, ti: (0, 0)),
            _resident((1, D), lambda bi, ti: (0, 0)),
            pl.BlockSpec((tt, D), lambda bi, ti: (ti, 0)),   # PE reused across batch
        ],
        out_specs=pl.BlockSpec((1, tt, D), lambda bi, ti: (bi, ti, 0)),
        compiler_params=_cparams("parallel", "parallel"),
    )(x, wt, b.reshape(1, D), pe)


def attention_block(h, wq, wk, wv, bq, bk, bv, wo, bo, gamma, beta, eps=1e-5):
    """Fused in_proj + SDPA + out_proj + residual + LayerNorm1.

    h: (B, T, D) bf16.  Weights are stored head-split:
      wq/wk/wv: (H, D, dh) bf16, bq/bk/bv: (H, 1, dh) f32,
      wo: (H, dh, D) bf16, bo/gamma/beta: (D,) f32.
    """
    B, T, D = h.shape
    H, _, dh = wq.shape
    scale = 1.0 / math.sqrt(dh)
    return pl.pallas_call(
        functools.partial(_attn_block_kernel, scale=scale, eps=eps),
        out_shape=jax.ShapeDtypeStruct((B, T, D), jnp.bfloat16),
        grid=(B, H),
        in_specs=[
            pl.BlockSpec((1, T, D), lambda bi, hh: (bi, 0, 0)),   # h (resident over heads)
            pl.BlockSpec((1, D, dh), lambda bi, hh: (hh, 0, 0)),  # wq[head]
            pl.BlockSpec((1, D, dh), lambda bi, hh: (hh, 0, 0)),  # wk[head]
            pl.BlockSpec((1, D, dh), lambda bi, hh: (hh, 0, 0)),  # wv[head]
            pl.BlockSpec((1, 1, dh), lambda bi, hh: (hh, 0, 0)),  # bq[head]
            pl.BlockSpec((1, 1, dh), lambda bi, hh: (hh, 0, 0)),  # bk[head]
            pl.BlockSpec((1, 1, dh), lambda bi, hh: (hh, 0, 0)),  # bv[head]
            pl.BlockSpec((1, dh, D), lambda bi, hh: (hh, 0, 0)),  # wo[head]
            _resident((1, D), lambda bi, hh: (0, 0)),             # bo
            _resident((1, D), lambda bi, hh: (0, 0)),             # ln1 gamma
            _resident((1, D), lambda bi, hh: (0, 0)),             # ln1 beta
        ],
        out_specs=pl.BlockSpec((1, T, D), lambda bi, hh: (bi, 0, 0)),
        scratch_shapes=[pltpu.VMEM((T, D), jnp.float32)],
        compiler_params=_cparams("parallel", "arbitrary"),
    )(h, wq, wk, wv, bq, bk, bv, wo, bo.reshape(1, D),
      gamma.reshape(1, D), beta.reshape(1, D))


def ffn_add_ln(h, w1t, b1, w2t, b2, gamma, beta, eps=1e-5):
    """LayerNorm(h + relu(h @ w1t + b1) @ w2t + b2); h: (N, D) bf16."""
    n, d = h.shape
    f = w1t.shape[1]
    tm = _row_tile(n, target=256)       # FFN tile kept at 256 (v7x VMEM budget)
    fc = _col_tile(f, target=1024)      # F-axis chunking caps intermediates
    return pl.pallas_call(
        functools.partial(_ffn_ln_kernel, eps=eps),
        out_shape=jax.ShapeDtypeStruct((n, d), jnp.bfloat16),
        grid=(n // tm, f // fc),
        in_specs=[
            pl.BlockSpec((tm, d), lambda i, c: (i, 0)),
            pl.BlockSpec((d, fc), lambda i, c: (0, c)),
            pl.BlockSpec((1, fc), lambda i, c: (0, c)),
            pl.BlockSpec((fc, d), lambda i, c: (c, 0)),
            _resident((1, d), lambda i, c: (0, 0)),
            _resident((1, d), lambda i, c: (0, 0)),
            _resident((1, d), lambda i, c: (0, 0)),
        ],
        out_specs=pl.BlockSpec((tm, d), lambda i, c: (i, 0)),
        scratch_shapes=[pltpu.VMEM((tm, d), jnp.float32)],
        compiler_params=_cparams("parallel", "arbitrary"),
    )(h, w1t, b1.reshape(1, f), w2t, b2.reshape(1, d),
      gamma.reshape(1, d), beta.reshape(1, d))


# --------------------------------------------------------------------------
# Model: parameters + forward
# --------------------------------------------------------------------------

def make_positional_encoding(model_dim, max_len=1000):
    position = jnp.arange(max_len, dtype=jnp.float32)[:, None]
    div_term = jnp.exp(jnp.arange(0, model_dim, 2, dtype=jnp.float32)
                       * (-math.log(10000.0) / model_dim))
    pe = jnp.zeros((max_len, model_dim), jnp.float32)
    pe = pe.at[:, 0::2].set(jnp.sin(position * div_term))
    pe = pe.at[:, 1::2].set(jnp.cos(position * div_term))
    return pe                                        # (max_len, model_dim)


def init_params(key, input_dim, output_dim, model_dim, num_heads, num_layers,
                dim_feedforward=2048):
    """Weights stored pre-transposed (Din, Dout), attention weights head-split."""
    D, H = model_dim, num_heads
    dh = D // H

    def dense_t(k, din, dout, dtype=jnp.bfloat16):
        return (jax.random.normal(k, (din, dout), jnp.float32) * 0.02).astype(dtype)

    keys = jax.random.split(key, 2 + num_layers)
    params = {
        "model_dim": D,
        "num_heads": H,
        "pe": make_positional_encoding(D),
        "emb_wt": dense_t(keys[0], input_dim, D),
        "emb_b": jnp.zeros((D,), jnp.float32),
        "dec_wt": dense_t(keys[1], D, output_dim),       # bf16 decoder weight
        "dec_b": jnp.zeros((output_dim,), jnp.float32),
        "layers": [],
    }
    for l in range(num_layers):
        lk = jax.random.split(keys[2 + l], 4)
        # in_proj pre-transposed (D, 3D) as a converted torch checkpoint would be,
        # then split per-head once at init time (no per-call transposes).
        in_proj = dense_t(lk[0], D, 3 * D)
        wq = in_proj[:, 0 * D:1 * D].reshape(D, H, dh).transpose(1, 0, 2)
        wk = in_proj[:, 1 * D:2 * D].reshape(D, H, dh).transpose(1, 0, 2)
        wv = in_proj[:, 2 * D:3 * D].reshape(D, H, dh).transpose(1, 0, 2)
        out_proj = dense_t(lk[1], D, D)                  # (D, D) pre-transposed
        params["layers"].append({
            "wq": wq, "wk": wk, "wv": wv,                          # (H, D, dh)
            "bq": jnp.zeros((H, 1, dh), jnp.float32),
            "bk": jnp.zeros((H, 1, dh), jnp.float32),
            "bv": jnp.zeros((H, 1, dh), jnp.float32),
            "wo": out_proj.reshape(H, dh, D),                      # (H, dh, D)
            "bo": jnp.zeros((D,), jnp.float32),
            "lin1_wt": dense_t(lk[2], D, dim_feedforward),
            "lin1_b": jnp.zeros((dim_feedforward,), jnp.float32),
            "lin2_wt": dense_t(lk[3], dim_feedforward, D),
            "lin2_b": jnp.zeros((D,), jnp.float32),
            "ln1_g": jnp.ones((D,), jnp.float32),
            "ln1_b": jnp.zeros((D,), jnp.float32),
            "ln2_g": jnp.ones((D,), jnp.float32),
            "ln2_b": jnp.zeros((D,), jnp.float32),
        })
    return params


def transformer_forward(params, src):
    """src: (B, T, input_dim) -> (B, T, output_dim).

    nn.Transformer's (T, B, C) seq-major layout is a convention only; per-token
    linears/LayerNorms and per-batch attention are layout-invariant, so we keep
    batch-major (B, T, D) end to end (no host transposes).
    """
    B, T, _ = src.shape
    D = params["model_dim"]

    x = src.astype(jnp.bfloat16)
    pe = params["pe"][:T].astype(jnp.bfloat16)                     # (T, D) bf16

    # embedding * sqrt(D) + positional encoding (fused)
    h = embed(x, params["emb_wt"], params["emb_b"], pe,
              math.sqrt(float(D)))                                 # (B, T, D)

    for lp in params["layers"]:
        # in_proj + attention + out_proj + residual + LN1: one fused kernel
        h = attention_block(h, lp["wq"], lp["wk"], lp["wv"],
                            lp["bq"], lp["bk"], lp["bv"],
                            lp["wo"], lp["bo"], lp["ln1_g"], lp["ln1_b"])
        # lin1 + relu + lin2 + residual + LN2: one fused kernel (F-chunked)
        h = ffn_add_ln(h.reshape(B * T, D), lp["lin1_wt"], lp["lin1_b"],
                       lp["lin2_wt"], lp["lin2_b"], lp["ln2_g"],
                       lp["ln2_b"]).reshape(B, T, D)

    # Decoder: tiny lane-sparse output -> plain bf16 matmul with f32 accumulate.
    out = jnp.dot(h, params["dec_wt"],
                  preferred_element_type=jnp.float32) + params["dec_b"]
    return out                                                     # (B, T, out)


# --------------------------------------------------------------------------
# Demo
# --------------------------------------------------------------------------

if __name__ == "__main__":
    B, T = 2, 8
    input_dim, output_dim = 8, 4
    model_dim, num_heads, num_layers = 128, 4, 2   # lane-dense D (multiple of 128)

    key = jax.random.PRNGKey(0)
    pkey, xkey = jax.random.split(key)
    params = init_params(pkey, input_dim, output_dim, model_dim, num_heads,
                         num_layers)
    src = jax.random.normal(xkey, (B, T, input_dim), jnp.float32)

    out = transformer_forward(params, src)
    out = jax.block_until_ready(out)
    assert out.shape == (B, T, output_dim), out.shape
    assert bool(jnp.all(jnp.isfinite(out)))
    print("KERNEL_OK")
</pallas_src>

<mosaic_0001>
module attributes {stable_mosaic.version = 11 : i64} {
  func.func @_embed_kernel(%arg0: i32, %arg1: i32, %arg2: memref<1x8x8xbf16, #tpu.memory_space<vmem>>, %arg3: memref<8x128xbf16, #tpu.memory_space<vmem>>, %arg4: memref<1x128xf32, #tpu.memory_space<vmem>>, %arg5: memref<8x128xbf16, #tpu.memory_space<vmem>>, %arg6: memref<1x8x128xbf16, #tpu.memory_space<vmem>>) attributes {dimension_semantics = [#tpu.dimension_semantics<parallel>, #tpu.dimension_semantics<parallel>], iteration_bounds = array<i64: 2, 1>, scalar_prefetch = 0 : i64, scratch_operands = 0 : i64, tpu.core_type = #tpu.core_type<tc>, window_params = [{transform_indices = @transform_0, window_bounds = array<i64: 1, 8, 8>}, {pipeline_mode = #tpu.pipeline_mode<synchronous>, transform_indices = @transform_1, window_bounds = array<i64: 8, 128>}, {pipeline_mode = #tpu.pipeline_mode<synchronous>, transform_indices = @transform_2, window_bounds = array<i64: 1, 128>}, {transform_indices = @transform_3, window_bounds = array<i64: 8, 128>}, {transform_indices = @transform_4, window_bounds = array<i64: 1, 8, 128>}]} {
    %c0 = arith.constant 0 : index
    %c0_0 = arith.constant 0 : index
    %c0_1 = arith.constant 0 : index
    %0 = vector.load %arg2[%c0, %c0_0, %c0_1] : memref<1x8x8xbf16, #tpu.memory_space<vmem>>, vector<1x8x8xbf16>
    %1 = vector.shape_cast %0 : vector<1x8x8xbf16> to vector<8x8xbf16>
    %c0_2 = arith.constant 0 : index
    %c0_3 = arith.constant 0 : index
    %2 = vector.load %arg3[%c0_2, %c0_3] : memref<8x128xbf16, #tpu.memory_space<vmem>>, vector<8x128xbf16>
    %cst = arith.constant dense<0.000000e+00> : vector<8x128xf32>
    %3 = tpu.matmul %1, %2, %cst {dimension_numbers = #tpu.dot_dimension_numbers<[1], [0], [0], [1], [0, 0, 1, 1], [], []>} : vector<8x8xbf16>, vector<8x128xbf16>, vector<8x128xf32> -> vector<8x128xf32>
    %c0_4 = arith.constant 0 : index
    %c0_5 = arith.constant 0 : index
    %4 = vector.load %arg4[%c0_4, %c0_5] : memref<1x128xf32, #tpu.memory_space<vmem>>, vector<1x128xf32>
    %5 = vector.broadcast %4 : vector<1x128xf32> to vector<8x128xf32>
    %6 = arith.addf %3, %5 : vector<8x128xf32>
    %cst_6 = arith.constant 11.3137083 : f32
    %7 = vector.broadcast %cst_6 : f32 to vector<8x128xf32>
    %8 = arith.mulf %6, %7 : vector<8x128xf32>
    %c0_7 = arith.constant 0 : index
    %c0_8 = arith.constant 0 : index
    %9 = vector.load %arg5[%c0_7, %c0_8] : memref<8x128xbf16, #tpu.memory_space<vmem>>, vector<8x128xbf16>
    %10 = arith.extf %9 : vector<8x128xbf16> to vector<8x128xf32>
    %11 = arith.addf %8, %10 : vector<8x128xf32>
    %12 = arith.truncf %11 : vector<8x128xf32> to vector<8x128xbf16>
    %c0_9 = arith.constant 0 : index
    %c0_10 = arith.constant 0 : index
    %c0_11 = arith.constant 0 : index
    %13 = vector.load %arg6[%c0_9, %c0_10, %c0_11] : memref<1x8x128xbf16, #tpu.memory_space<vmem>>, vector<1x8x128xbf16>
    %14 = vector.shape_cast %13 : vector<1x8x128xbf16> to vector<8x128xbf16>
    %15 = vector.shape_cast %12 : vector<8x128xbf16> to vector<1x8x128xbf16>
    tpu.vector_store %arg6[%c0_9, %c0_10, %c0_11], %15 {strides = array<i32>} : memref<1x8x128xbf16, #tpu.memory_space<vmem>>, vector<1x8x128xbf16>,
    return
  }
  func.func @transform_0(%arg0: i32, %arg1: i32) -> (i32, i32, i32) {
    %c0_i32 = arith.constant 0 : i32
    %c0_i32_0 = arith.constant 0 : i32
    return %arg0, %arg1, %c0_i32 : i32, i32, i32
  }
  func.func @transform_1(%arg0: i32, %arg1: i32) -> (i32, i32) {
    %c0_i32 = arith.constant 0 : i32
    %c0_i32_0 = arith.constant 0 : i32
    %c0_i32_1 = arith.constant 0 : i32
    return %c0_i32, %c0_i32_0 : i32, i32
  }
  func.func @transform_2(%arg0: i32, %arg1: i32) -> (i32, i32) {
    %c0_i32 = arith.constant 0 : i32
    %c0_i32_0 = arith.constant 0 : i32
    %c0_i32_1 = arith.constant 0 : i32
    return %c0_i32, %c0_i32_0 : i32, i32
  }
  func.func @transform_3(%arg0: i32, %arg1: i32) -> (i32, i32) {
    %c0_i32 = arith.constant 0 : i32
    %c0_i32_0 = arith.constant 0 : i32
    return %arg1, %c0_i32 : i32, i32
  }
  func.func @transform_4(%arg0: i32, %arg1: i32) -> (i32, i32, i32) {
    %c0_i32 = arith.constant 0 : i32
    %c0_i32_0 = arith.constant 0 : i32
    return %arg0, %arg1, %c0_i32 : i32, i32, i32
  }
}

</mosaic_0001>

<bundles_post_ra>
// kernel: tpu_custom_call.1
= control target key start
LH: loop header
LB: loop body
LE: loop exit
PB: predicated region body
PF: predicated region fallthrough
CT: control target
= control target key end

     0   :  { %9 = vsyncpa [#allocation3], 0  ;;  %s872_s0 = inlined_call_operand.hbm [shape: bf16[2,8,8], index: 0, kind: input, shape index: {}]   ;;  %s873_s1 = inlined_call_operand.hbm [shape: bf16[8,128], index: 1, kind: input, shape index: {}]   ;;  %s874_s2 = inlined_call_operand.vmem [shape: f32[1,128], index: 2, kind: input, shape index: {}]   ;;  %s875_s3 = inlined_call_operand.hbm [shape: bf16[8,128], index: 3, kind: input, shape index: {}]   ;;  %s876_s4 = inlined_call_operand.hbm [shape: bf16[2,8,128], index: 4, kind: output, shape index: {}]  }
   0x1   :  { %11 = vsyncpa [#allocation3 + $0x1], 0 }
   0x2   :  { %12 = vsyncpa [#allocation6], 0 }
   0x3   :  { %13 = vsyncpa [#allocation4], 0 }
   0x4   :  { %15 = vsyncpa [#allocation4 + $0x1], 0  ;;  %s727_s15 = smov 0   ;;  %s729_s16 = smov 0  }
   0x5   :  { %s731_s17 = smov 0   ;;  %s733_s18 = smov 0  }
   0x6   :  { %s735_s19 = smov 0   ;;  %s737_s20 = smov 0  }
   0x7 LB: > { %s420_s21 = sadd.s32 4294967295, %s698_s20   ;;  %s421_s22 = sadd.s32 4294967294, %s698_s20   ;;  %s698_s20 = sphi %s737_s20, %s21_s20   ;;  %s694_s19 = sphi %s735_s19, %s886_s19   ;;  %s690_s18 = sphi %s733_s18, %s885_s18   ;;  %s686_s17 = sphi %s731_s17, %s884_s17   ;;  %s682_s16 = sphi %s729_s16, %s883_s16   ;;  %s678_s15 = sphi %s727_s15, %s882_s15  }
   0x8   : > { %p55_p0 = scmp.ne.s32.totalorder %s682_s16, %s678_s15  ;;  %p761_p1 = scmp.eq.s32.totalorder %s420_s21, 0 }
   0x9   : > { %p155_p2 = scmp.eq.s32.totalorder %s421_s22, 1  ;;  %p422_p4 = scmp.ge.s32.totalorder %s698_s20, 1 }
   0xa   : > { %p767_p3 = por %p761_p1, %p55_p0  ;;  %p162_p6 = scmp.lt.s32.totalorder %s698_s20, 3 }
   0xb   : > { %p772_p5 = por %p155_p2, %p55_p0  ;;  %s174_s28 = sshll.u32 %s873_s1, 4  ;;  %s175_s28 = int_to_ptr.hbm [resolvable:$true] %s174_s28 }
   0xc   : > { %p780_p7 = pnand %p422_p4, %p162_p6  ;;  %p425_p8 = scmp.ge.s32.totalorder %s698_s20, 2 }
   0xd   : > { %s700_s30 = smov [#allocation5]   ;;  %s191_s8 = sshll.u32 %s875_s3, 4  ;;  %s192_s8 = int_to_ptr.hbm [resolvable:$true] %s191_s8 }
   0xe   : > { %p450_p9 = pneg %p780_p7  ;;  %s176_s5 = sshll.u32 %s700_s30, 4  ;;  %s177_s5 = int_to_ptr.vmem [resolvable:$true] %s176_s5 }
   0xf   : > { %s701_s9 = smov [#allocation7]   ;;  %p149_p11 = scmp.eq.s32.totalorder %s420_s21, 1 }
  0x10   : > { %p451_p10 = pnand %p450_p9, %p761_p1  ;;  %s193_s10 = sshll.u32 %s701_s9, 4  ;;  %s194_s10 = int_to_ptr.vmem [resolvable:$true] %s193_s10 }
  0x11   : > { %s33_s11 = sadd.s32 1, %s694_s19  ;;  %s42_s12 = sadd.s32 1, %s686_s17 }
  0x12   : > { %453 = dma.hbm_to_vmem [thread:$0]  (!%p451_p10), %s175_s28, 64, %s177_s5, [#allocation6]  }
  0x13   : > { %456 = dma.hbm_to_vmem [thread:$0]  (!%p451_p10), %s192_s8, 64, %s194_s10, [#allocation6]  }
  0x14   : > { %p35_p12 = scmp.ge.s32.totalorder %s33_s11, 2  ;;  %p49_p13 = scmp.ne.s32.totalorder %s686_s17, %s682_s16 }
  0x15   : > { %p50_p0 = scmp.eq.s32.totalorder %s698_s20, 0  ;;  %p467_p4 = scmp.lt.s32.totalorder %s698_s20, 2 }
  0x16   : > { %s888_s11 = smov (%p35_p12, %s33_s11), 0  ;;  %p799_p2 = por %p149_p11, %p49_p13 }
  0x17   : > { %s37_s14 = ssub.s32 %s694_s19, %s888_s11  ;;  %s204_s22 = sand.u32 1, %s686_s17  }
  0x18   : > { %p40_p6 = scmp.eq.s32.totalorder %s37_s14, 0  ;;  %p51_p9 = por %p50_p0, %p49_p13 }
  0x19   : > { %s426_s26 = sshll.u32 %s204_s22, 2  ;;  %s427_s21 = sshll.u32 %s694_s19, 2 }
  0x1a   : > { %s809_s27 = scalar_select %p40_p6, %s686_s17, %s42_s12  }
  0x1b   : > { %s213_s5 = scalar_lea.hbm %s872_s0, %s427_s21  ;;  %s208_s7 = scalar_lea.vmem [#allocation2], %s426_s26 }
  0x1c   : > { %s215_s6 = sshll.u32 %s213_s5, 4  ;;  %s217_s8 = sshll.u32 %s208_s7, 4  ;;  %s216_s6 = int_to_ptr.hbm [resolvable:$true] %s215_s6  ;;  %s218_s8 = int_to_ptr.vmem [resolvable:$true] %s217_s8 }
  0x1d   : > { %p458_p10 = pnand %p467_p4, %p51_p9  ;;  %s205_s9 = scalar_lea.sflag [#allocation3], %s204_s22 }
  0x1e   : > { %226 = sbr.rel (%p780_p7) target bundleno = 180 (0xb4), region = 36  ;;  %s819_s10 = sand.u32 (!%p780_p7), 1, %s682_s16  }
  0x1f   : > { %460 = dma.hbm_to_vmem [thread:$0]  (!%p458_p10), %s216_s6, 64, %s218_s8, %s205_s9  }
  0x20   : > { %s429_s12 = sshll.u32 (!%p780_p7), %s819_s10, 2  ;;  %s229_s14 = scalar_lea.sflag (!%p780_p7), [#allocation3], %s819_s10 }
  0x21   : > { %s232_s21 = scalar_lea.vmem (!%p780_p7), [#allocation2], %s429_s12 }
  0x23   : > { %665 = dma.done.wait (%p767_p3), %s229_s14, 64  }
  0x24   : > { %667 = vsyncadd (%p767_p3), %s229_s14, 4294967232 }
  0x25   : > { %669 = dma.done.wait (%p761_p1), [#allocation6], 128  }
  0x26   : > { %671 = vsyncadd (%p761_p1), [#allocation6], 4294967168  ;;  %vm279_vm0 = vcmask 1043456   ;;  %v270_v0 = vld [vmem:[#allocation5] sm:$0xf]  ;;  %vm275_vm1 = vcmask 64512  }
  0x27   : > { %v281_v1 = vsel %vm279_vm0, %v270_v0, 0  ;;  %v269_v2 = vld [vmem:[%s232_s21] sm:$0xf]  ;;  %v297_v4 = vld [vmem:[#allocation7] sm:$0xf]  ;;  %s435_s24 = sshll.u32 %s690_s18, 2 }
  0x28   : > { %290 = vmatpush.bf16.msra.mxu0 %v281_v1  ;;  %v521_v3 = vld [vmem:[%s874_s2] ss:$0 sm:$0xff]  ;;  %v298_v7 = vunpack.c.l.bf16 %v297_v4  ;;  %s314_s28 = scalar_lea.hbm %s876_s4, %s435_s24  ;;  %s267_s30 = scalar_lea.vmem [#allocation8], %s429_s12 }
  0x29   : > { %s316_s5 = sshll.u32 %s267_s30, 4  ;;  %s318_s6 = sshll.u32 %s314_s28, 4  ;;  %s317_s5 = int_to_ptr.vmem [resolvable:$true] %s316_s5  ;;  %s319_s6 = int_to_ptr.hbm [resolvable:$true] %s318_s6 }
  0x2a   : > { %s303_s7 = scalar_lea.sflag [#allocation4], %s819_s10  ;;  %s626_s18 = sshra.s32 %s319_s6, 4  ;;  %s627_s18 = int_to_ptr.hbm [resolvable:$true] %s626_s18 }
  0x2b   : > { %433 = vmatmul.msk.bf16.vlgmr.msra.gmra.mxu0 %vm275_vm1, %v269_v2  ;;  %s628_s8 = scalar_lea.hbm %s627_s18, 4  ;;  %s632_s12 = scalar_lea.hbm %s876_s4, 8 }
  0x2c   : > { %p629_p1 = scmp.ne.s32.totalorder %s627_s18, %s628_s8  ;;  %p633_p11 = scmp.lt.s32.totalorder %s627_s18, %s876_s4 }
  0x2d   : > { %p634_p12 = scmp.lt.s32.totalorder %s632_s12, %s628_s8 }
  0x2e   : > { %p630_p3 = pnand %p629_p1, %p799_p2 }
  0x2f   : > { %p635_p13 = por %p634_p12, %p633_p11 }
  0x30   : > { %p631_p7 = pneg %p630_p3 }
  0x32   : > { %p636_p0 = pnand %p635_p13, %p631_p7 }
  0xa8   : > { %v292_v5 = vpop.f32.mrf.mxu0 }
  0xa9   : > { %v293_v6 = vadd.f32 %v521_v3, %v292_v5 }
  0xab   : > { %v296_v8 = vmul.f32 11.313708, %v293_v6 }
  0xad   : > { %v299_v9 = vadd.f32 %v298_v7, %v296_v8 }
  0xaf   : > { %v300_v10 = vpack.c.bf16 %v299_v9, %v299_v9 }
  0xb0   : > { %v294_v11 = vpop.f32.mrf.mxu0 }
  0xb1   : > { %301 = vst [vmem:[%s267_s30] sm:$0xf] %v300_v10 }
  0xb2   : > { %639 = shalt.err (!%p636_p0)
}
  0xb3   : > { %448 = dma.vmem_to_hbm [thread:$0]  (%p799_p2), %s317_s5, 64, %s319_s6, %s303_s7  }
  0xb4 PF: > { %s330_s10 = sand.u32 1, %s678_s15   ;;  %p462_p4 = pnand %p425_p8, %p772_p5 }
  0xb5   : > { %s331_s22 = scalar_lea.sflag [#allocation4], %s330_s10 }
  0xb6   : > { %p463_p6 = pneg %p462_p4 }
  0xb8   : > { %673 = dma.done.wait (%p463_p6), %s331_s22, 64  }
  0xb9   : > { %675 = vsyncadd (%p463_p6), %s331_s22, 4294967232  ;;  %s21_s20 = sadd.s32 1, %s698_s20   ;;  %s882_s15 = smov %s682_s16 }
  0xba   : > { %p18_p9 = scmp.ge.s32.totalorder %s21_s20, 4   ;;  %s883_s16 = smov %s686_s17 }
  0xbb   : > { %s884_s17 = smov %s809_s27  ;;  %s885_s18 = smov %s694_s19 }
  0xbc   : > { %s886_s19 = smov %s888_s11  ;;  %20 = sbr.rel (!%p18_p9) target bundleno = 7 (0x7), region = 90 }
  0xc1   :  { %337 = vsyncpa [#allocation3], 1 }
  0xc2   :  { %339 = vsyncpa [#allocation3 + $0x1], 1 }
  0xc3   :  { %340 = vsyncpa [#allocation6], 1 }
  0xc4   :  { %341 = vsyncpa [#allocation4], 1 }
  0xc5   :  { %343 = vsyncpa [#allocation4 + $0x1], 1 }

</bundles_post_ra>
